<compile_context>
chip_gen: v6e
topology: v6e:2x2x1
jax: 0.10.0
libtpu: 0.0.40
codegen_flags: <defaults>
</compile_context>

<pallas_src>
import jax
import jax.numpy as jnp
import numpy as np
from jax.experimental import pallas as pl
from jax.experimental.pallas import tpu as pltpu


def _round_up(x, m):
    return ((x + m - 1) // m) * m


def _vmem_capacity_bytes():
    """Best-effort VMEM capacity query; conservative fallback (v7x per-TC)."""
    try:
        cap = int(pltpu.get_tpu_info().vmem_capacity_bytes)
        if cap > 0:
            return cap
    except Exception:
        pass
    return 64 * 1024 * 1024


# ---------------------------------------------------------------------------
# Fast path: VMEM-resident table, token-tiled one-hot MXU gather.
# ---------------------------------------------------------------------------
def _onehot_gather_kernel(ids_ref, emb_ref, out_ref):
    # ids_ref: (TB, 1) int32      -- token ids for this tile
    # emb_ref: (vocab, emb_dim)   -- full embedding table (constant block index
    #                                => VMEM resident, not re-fetched per step)
    # out_ref: (TB, emb_dim) f32  -- output tile (written at native width)
    tb = out_ref.shape[0]
    vocab = emb_ref.shape[0]
    ids = ids_ref[...]                                            # (TB, 1)
    iota = jax.lax.broadcasted_iota(jnp.int32, (tb, vocab), 1)    # (TB, vocab)
    onehot = (iota == ids).astype(emb_ref.dtype)                  # (TB, vocab)
    # One-hot gather on the MXU.  HIGHEST keeps the f32 rows exact (the
    # selected row's three bf16 chunks are all among the retained passes).
    out_ref[...] = jnp.dot(
        onehot, emb_ref[...],
        preferred_element_type=jnp.float32,
        precision=jax.lax.Precision.HIGHEST,
    ).astype(out_ref.dtype)


def _encoder_forward_onehot(ids_flat, emb_table, n_tok, cap):
    vocab, emb_dim = emb_table.shape

    # Token tile: keep TB >= 128 (MXU M-dim utilization, amortized per-step
    # overhead); cap only so that (a) the (TB, vocab) f32 one-hot intermediate
    # stays within a generous VMEM budget and (b) the grid keeps >= 4 steps
    # when there are enough tokens (v7x megacore sharding).
    onehot_budget = 8 << 20
    tb = 512
    while tb > 128 and (tb * vocab * 4 > onehot_budget
                        or _round_up(n_tok, tb) // tb < 4):
        tb //= 2
    tb = min(tb, _round_up(n_tok, 8))          # tiny inputs: don't over-pad
    n_tok_pad = _round_up(n_tok, tb)

    ids_pad = jnp.pad(ids_flat, (0, n_tok_pad - n_tok))   # pad id 0 (valid row)
    ids_2d = ids_pad.reshape(n_tok_pad, 1)

    table_bytes = vocab * emb_dim * 4
    out_tile_bytes = tb * emb_dim * 4
    onehot_bytes = tb * vocab * 4
    # Account 2 pipeline buffers for the (constant-index) table so v7x's
    # 64 MiB/TC budget is respected even if Pallas double-buffers it.
    vmem_need = (2 * table_bytes + 2 * onehot_bytes + 3 * out_tile_bytes
                 + 3 * tb * 4 + (2 << 20))
    vmem_limit = int(min(max(vmem_need, 8 << 20), int(cap * 0.9)))

    cost = pl.CostEstimate(
        # f32 x f32 HIGHEST lowers to ~6 bf16 MXU passes.
        flops=6 * 2 * n_tok_pad * vocab * emb_dim,
        transcendentals=0,
        bytes_accessed=table_bytes + n_tok_pad * 4 + n_tok_pad * emb_dim * 4,
    )

    out = pl.pallas_call(
        _onehot_gather_kernel,
        out_shape=jax.ShapeDtypeStruct((n_tok_pad, emb_dim), emb_table.dtype),
        grid_spec=pltpu.PrefetchScalarGridSpec(
            num_scalar_prefetch=0,
            grid=(n_tok_pad // tb,),
            in_specs=[
                pl.BlockSpec((tb, 1), lambda i: (i, 0)),            # ids tile
                pl.BlockSpec((vocab, emb_dim), lambda i: (0, 0)),   # whole table
            ],
            out_specs=pl.BlockSpec((tb, emb_dim), lambda i: (i, 0)),
        ),
        compiler_params=pltpu.CompilerParams(
            dimension_semantics=("parallel",),    # disjoint output tiles
            vmem_limit_bytes=vmem_limit,
        ),
        cost_estimate=cost,
    )(ids_2d, emb_table)

    return out[:n_tok] if n_tok_pad != n_tok else out


# ---------------------------------------------------------------------------
# Fallback path: HBM table, batched manual-DMA row gather (TB rows per step).
# ---------------------------------------------------------------------------
def _dma_gather_kernel(ids_ref, table_ref, out_ref, row_buf, sem):
    # ids_ref:   SMEM (n_tok_pad,) int32   (scalar prefetch)
    # table_ref: HBM  (vocab, emb_dim)     (memory_space=pl.ANY)
    # out_ref:   VMEM (TB, emb_dim)        (pipelined output tile)
    # row_buf:   VMEM (TB, emb_dim) scratch
    # sem:       single DMA semaphore shared by all row copies of this step
    i = pl.program_id(0)
    tb = out_ref.shape[0]
    base = i * tb

    # Issue all TB row gathers -- they overlap each other in the DMA engine,
    # and overlap the pipelined writeback of the previous output tile.
    @pl.loop(0, tb)
    def _(k):
        row = ids_ref[base + k]
        pltpu.make_async_copy(
            table_ref.at[pl.ds(row, 1)],      # (1, emb_dim) HBM row
            row_buf.at[pl.ds(k, 1)],          # (1, emb_dim) VMEM slot
            sem,
        ).start()

    # Drain: every copy has identical size, so waiting once per issued copy
    # on the shared semaphore is exact regardless of completion order.
    @pl.loop(0, tb)
    def _(k):
        pltpu.make_async_copy(
            table_ref.at[pl.ds(0, 1)],
            row_buf.at[pl.ds(0, 1)],
            sem,
        ).wait()

    out_ref[...] = row_buf[...]


def _encoder_forward_dma(ids_flat, emb_table, n_tok):
    vocab, emb_dim = emb_table.shape

    tb = min(256, _round_up(n_tok, 8))        # 256 rows/step amortizes overhead
    n_tok_pad = _round_up(n_tok, tb)
    ids_pad = jnp.pad(ids_flat, (0, n_tok_pad - n_tok))   # pad id 0 (valid row)

    cost = pl.CostEstimate(
        flops=0,
        transcendentals=0,
        bytes_accessed=2 * n_tok_pad * emb_dim * 4 + n_tok_pad * 4,
    )

    out = pl.pallas_call(
        _dma_gather_kernel,
        out_shape=jax.ShapeDtypeStruct((n_tok_pad, emb_dim), emb_table.dtype),
        grid_spec=pltpu.PrefetchScalarGridSpec(
            num_scalar_prefetch=1,                       # ids land in SMEM
            grid=(n_tok_pad // tb,),
            in_specs=[pl.BlockSpec(memory_space=pl.ANY)],   # table stays in HBM
            out_specs=pl.BlockSpec((tb, emb_dim), lambda i, ids: (i, 0)),
            scratch_shapes=[
                pltpu.VMEM((tb, emb_dim), emb_table.dtype),
                pltpu.SemaphoreType.DMA(()),
            ],
        ),
        compiler_params=pltpu.CompilerParams(
            dimension_semantics=("arbitrary",),
        ),
        cost_estimate=cost,
    )(ids_pad, emb_table)

    return out[:n_tok] if n_tok_pad != n_tok else out


# ---------------------------------------------------------------------------
# Public wrapper == Encoder.forward (embedding lookup).
# ---------------------------------------------------------------------------
def encoder_forward(token_ids, emb_table, path="auto"):
    """Equivalent of Encoder.forward: embedding(input) == emb_table[input].

    token_ids: (seq_len, batch) int32
    emb_table: (vocab, emb_dim) float32 (frozen embedding weight)
    returns:   (seq_len, batch, emb_dim) float32
    path:      "auto" | "onehot" | "dma"  (auto gates on vocab/VMEM size)
    """
    seq_len, batch = token_ids.shape
    vocab, emb_dim = emb_table.shape
    n_tok = seq_len * batch

    ids_flat = token_ids.reshape(n_tok).astype(jnp.int32)
    emb_table = emb_table.astype(jnp.float32)

    cap = _vmem_capacity_bytes()
    if path == "auto":
        # Fast path only when the table (double-buffered) fits comfortably in
        # VMEM AND the vocab is small enough that the one-hot matmul stays
        # near the output-write roofline; otherwise batched DMA row gather.
        table_bytes = vocab * emb_dim * 4
        path = "onehot" if table_bytes <= min(cap // 4, 16 << 20) else "dma"

    if path == "onehot":
        out2d = _encoder_forward_onehot(ids_flat, emb_table, n_tok, cap)
    else:
        out2d = _encoder_forward_dma(ids_flat, emb_table, n_tok)

    return out2d.reshape(seq_len, batch, emb_dim)


if __name__ == "__main__":
    # Small, deterministic synthetic setup consistent with the module:
    # vocab stands in for len(data_loader.vocab_map); emb_dim = 200 as in
    # Encoder(embedding_size=200). Weights are synthetic (no emb_path file).
    vocab = 64
    emb_dim = 200
    seq_len = 8
    batch = 2

    key = jax.random.PRNGKey(0)
    k_emb, k_ids = jax.random.split(key)

    emb_table = jax.random.normal(k_emb, (vocab, emb_dim), dtype=jnp.float32)
    token_ids = jax.random.randint(k_ids, (seq_len, batch), 0, vocab,
                                   dtype=jnp.int32)

    # Reference: nn.Embedding(input) == emb_table[input]
    ref = jnp.take(emb_table, token_ids, axis=0)

    # Fast path (VMEM-resident table, one-hot MXU gather).
    out_fast = jax.block_until_ready(
        encoder_forward(token_ids, emb_table, path="onehot"))
    np.testing.assert_allclose(np.asarray(out_fast), np.asarray(ref),
                               rtol=1e-6, atol=1e-6)

    # Batched-DMA fallback path (exact row copies).
    out_dma = jax.block_until_ready(
        encoder_forward(token_ids, emb_table, path="dma"))
    np.testing.assert_allclose(np.asarray(out_dma), np.asarray(ref),
                               rtol=0, atol=0)

    # Auto-gated path (selects the fast path at this size).
    out_auto = jax.block_until_ready(encoder_forward(token_ids, emb_table))
    np.testing.assert_allclose(np.asarray(out_auto), np.asarray(ref),
                               rtol=1e-6, atol=1e-6)

    # TODO(synk): the original forward() with cuda=False returns None (missing
    # `return` in the source); only the meaningful embedding lookup is kernelized.
    print("KERNEL_OK")
</pallas_src>

<mosaic_0001>
module attributes {stable_mosaic.version = 11 : i64} {
  func.func @_onehot_gather_kernel(%arg0: i32, %arg1: memref<16x1xi32, #tpu.memory_space<vmem>>, %arg2: memref<64x200xf32, #tpu.memory_space<vmem>>, %arg3: memref<16x200xf32, #tpu.memory_space<vmem>>) attributes {dimension_semantics = [#tpu.dimension_semantics<parallel>], iteration_bounds = array<i64: 1>, scalar_prefetch = 0 : i64, scratch_operands = 0 : i64, tpu.core_type = #tpu.core_type<tc>, window_params = [{transform_indices = @transform_0, window_bounds = array<i64: 16, 1>}, {pipeline_mode = #tpu.pipeline_mode<synchronous>, transform_indices = @transform_1, window_bounds = array<i64: 64, 200>}, {transform_indices = @transform_2, window_bounds = array<i64: 16, 200>}]} {
    %c0 = arith.constant 0 : index
    %c0_0 = arith.constant 0 : index
    %0 = vector.load %arg1[%c0, %c0_0] : memref<16x1xi32, #tpu.memory_space<vmem>>, vector<16x1xi32>
    %1 = tpu.iota {dimensions = array<i32: 1>} : vector<16x64xi32>
    %2 = vector.broadcast %0 : vector<16x1xi32> to vector<16x64xi32>
    %3 = arith.cmpi eq, %1, %2 : vector<16x64xi32>
    %4 = arith.extui %3 : vector<16x64xi1> to vector<16x64xi32>
    %5 = arith.sitofp %4 : vector<16x64xi32> to vector<16x64xf32>
    %c0_1 = arith.constant 0 : index
    %c0_2 = arith.constant 0 : index
    %6 = vector.load %arg2[%c0_1, %c0_2] : memref<64x200xf32, #tpu.memory_space<vmem>>, vector<64x200xf32>
    %cst = arith.constant dense<0.000000e+00> : vector<16x200xf32>
    %7 = tpu.matmul %5, %6, %cst {dimension_numbers = #tpu.dot_dimension_numbers<[1], [0], [0], [1], [0, 0, 1, 1], [], []>, precision = #tpu.contract_precision<fp32>} : vector<16x64xf32>, vector<64x200xf32>, vector<16x200xf32> -> vector<16x200xf32>
    %c0_3 = arith.constant 0 : index
    %c0_4 = arith.constant 0 : index
    %8 = vector.load %arg3[%c0_3, %c0_4] : memref<16x200xf32, #tpu.memory_space<vmem>>, vector<16x200xf32>
    tpu.vector_store %arg3[%c0_3, %c0_4], %7 {strides = array<i32>} : memref<16x200xf32, #tpu.memory_space<vmem>>, vector<16x200xf32>,
    return
  }
  func.func @transform_0(%arg0: i32) -> (i32, i32) {
    %c0_i32 = arith.constant 0 : i32
    %c0_i32_0 = arith.constant 0 : i32
    return %arg0, %c0_i32 : i32, i32
  }
  func.func @transform_1(%arg0: i32) -> (i32, i32) {
    %c0_i32 = arith.constant 0 : i32
    %c0_i32_0 = arith.constant 0 : i32
    %c0_i32_1 = arith.constant 0 : i32
    return %c0_i32, %c0_i32_0 : i32, i32
  }
  func.func @transform_2(%arg0: i32) -> (i32, i32) {
    %c0_i32 = arith.constant 0 : i32
    %c0_i32_0 = arith.constant 0 : i32
    return %arg0, %c0_i32 : i32, i32
  }
}

</mosaic_0001>

<bundles_post_ra>
// kernel: tpu_custom_call.1
= control target key start
LH: loop header
LB: loop body
LE: loop exit
PB: predicated region body
PF: predicated region fallthrough
CT: control target
= control target key end

     0   :  { %7 = vsyncpa [#allocation3], 0  ;;  %s1157_s0 = inlined_call_operand.vmem [shape: s32[16,1], index: 0, kind: input, shape index: {}]   ;;  %s1158_s1 = inlined_call_operand.hbm [shape: f32[64,200], index: 1, kind: input, shape index: {}]   ;;  %s1159_s2 = inlined_call_operand.hbm [shape: f32[16,200], index: 2, kind: output, shape index: {}]  }
   0x1   :  { %8 = vsyncpa [#allocation4], 0  ;;  %s842_s9 = smov [#allocation2]  }
   0x2   :  { %s16_s10 = sshll.u32 %s842_s9, 4  ;;  %s17_s10 = int_to_ptr.vmem [resolvable:$true] %s16_s10 }
   0x3   :  { %s806_s11 = scalar_lea.vmem %s17_s10, 2048  ;;  %p811_p1 = scmp.lt.s32.totalorder %s17_s10, %s17_s10 }
   0x4   :  { %p807_p0 = scmp.ne.s32.totalorder %s17_s10, %s806_s11  ;;  %p812_p2 = scmp.lt.s32.totalorder %s806_s11, %s806_s11 }
   0x6   :  { %p813_p3 = por %p812_p2, %p811_p1 }
   0x8   :  { %p814_p4 = pnand %p813_p3, %p807_p0 }
   0xa   :  { %817 = shalt.err (!%p814_p4)
}
   0xb   :  { %s843_s12 = smov 256   ;;  %s844_s13 = smov 16  }
   0xc   :  { %22 = dma.hbm_to_vmem [thread:$0]  %s1158_s1, 2048, %s17_s10, [#allocation3], %s843_s12, %s843_s12, %s844_s13  }
   0xd   :  { %838 = dma.done.wait [#allocation3], 2048  }
   0xe   :  { %839 = vsyncadd [#allocation3], 4294965248  ;;  %v845_v0 = vmov 0   ;;  %v846_v1 = vmov 0.0   ;;  %v26_v2 = vld [vmem:[%s1157_s0] sm:$0xff]  ;;  %v27_v3 = vld [vmem:[%s1157_s0 + $0x8] sm:$0xff] }
   0xf   :  { %797 = vset.pattern.permute.xlu0 %v845_v0  ;;  %312 = vmatprep.mubr.f32.mxu1 %v846_v1  ;;  %v57_v4 = vld [vmem:[#allocation2 + $0x78] sm:$0xff]  ;;  %v56_v6 = vld [vmem:[#allocation2 + $0x70] sm:$0xff]  ;;  %v55_v7 = vld [vmem:[#allocation2 + $0x68] sm:$0xff]  ;;  %vm58_vm0 = vcmask 523264   ;;  %vm762_vm3 = vcmask 588800   ;;  %s847_s0 = smov [#allocation5]  }
  0x10   :  { %145 = vmatprep.mubr.f32.mxu0 %v846_v1  ;;  %31 = vperm.xlu0 %797, %v26_v2   ;;  %v877_v5 = vand.u32 4294901760, %v57_v4  ;;  %v54_v8 = vld [vmem:[#allocation2 + $0x60] sm:$0xff]  ;;  %v879_v9 = vand.u32 4294901760, %v56_v6  ;;  %v881_v10 = vand.u32 4294901760, %v55_v7  ;;  %v53_v12 = vld [vmem:[#allocation2 + $0x58] sm:$0xff]  ;;  %v52_v13 = vld [vmem:[#allocation2 + $0x50] sm:$0xff] }
  0x11   :  { %v883_v11 = vand.u32 4294901760, %v54_v8  ;;  %v51_v14 = vld [vmem:[#allocation2 + $0x48] sm:$0xff]  ;;  %v888_v16 = vand.u32 4294901760, %v53_v12  ;;  %v890_v17 = vand.u32 4294901760, %v52_v13  ;;  %v50_v19 = vld [vmem:[#allocation2 + $0x40] sm:$0xff]  ;;  %v49_v40 = vld [vmem:[#allocation2 + $0x38] sm:$0xff] }
  0x12   :  { %v886_v15 = vsub.f32 %v57_v4, %v877_v5  ;;  %v892_v18 = vand.u32 4294901760, %v51_v14  ;;  %82 = vmatprep.subr.mxu0 %v877_v5  ;;  %v896_v20 = vsub.f32 %v56_v6, %v879_v9  ;;  %v899_v21 = vsub.f32 %v55_v7, %v881_v10  ;;  %v48_v45 = vld [vmem:[#allocation2 + $0x30] sm:$0xff]  ;;  %v47_v46 = vld [vmem:[#allocation2 + $0x28] sm:$0xff]  ;;  %v46_v47 = vld [vmem:[#allocation2 + $0x20] sm:$0xff]  ;;  %s771_s1 = sshll.u32 %s847_s0, 4  ;;  %s772_s1 = int_to_ptr.vmem [resolvable:$true] %s771_s1 }
  0x13   :  { %v902_v22 = vsub.f32 %v54_v8, %v883_v11  ;;  %v904_v23 = vand.u32 4294901760, %v50_v19  ;;  %84 = vmatpush1.msra.mxu0 %v879_v9  ;;  %v909_v25 = vsub.f32 %v53_v12, %v888_v16  ;;  %v912_v26 = vsub.f32 %v52_v13, %v890_v17  ;;  %v45_v52 = vld [vmem:[#allocation2 + $0x18] sm:$0xff]  ;;  %v44_v53 = vld [vmem:[#allocation2 + $0x10] sm:$0xff]  ;;  %v43_v54 = vld [vmem:[#allocation2 + $0x8] sm:$0xff]  ;;  %s818_s20 = scalar_lea.vmem %s772_s1, 512  ;;  %p823_p6 = scmp.lt.s32.totalorder %s772_s1, %s772_s1 }
  0x14   :  { %34 = vperm.xlu0 %797, %v27_v3   ;;  %v186_v24 = vand.u32 4294901760, %v886_v15  ;;  %v915_v27 = vsub.f32 %v51_v14, %v892_v18  ;;  %86 = vmatprep.subr.mxu0 %v881_v10  ;;  %v192_v28 = vand.u32 4294901760, %v896_v20  ;;  %v198_v29 = vand.u32 4294901760, %v899_v21  ;;  %v42_v59 = vld [vmem:[#allocation2] sm:$0xff]  ;;  %p819_p5 = scmp.ne.s32.totalorder %s772_s1, %s818_s20  ;;  %p824_p7 = scmp.lt.s32.totalorder %s818_s20, %s818_s20 }
  0x15   :  { %v204_v30 = vand.u32 4294901760, %v902_v22  ;;  %v922_v31 = vsub.f32 %v50_v19, %v904_v23  ;;  %88 = vmatpush1.msra.mxu0 %v883_v11  ;;  %v210_v33 = vand.u32 4294901760, %v909_v25  ;;  %v216_v34 = vand.u32 4294901760, %v912_v26 }
  0x16   :  { %v187_v32 = vsub.f32 %v886_v15, %v186_v24  ;;  %v222_v35 = vand.u32 4294901760, %v915_v27  ;;  %90 = vmatprep.subr.mxu0 %v888_v16  ;;  %v193_v36 = vsub.f32 %v896_v20, %v192_v28  ;;  %v199_v37 = vsub.f32 %v899_v21, %v198_v29  ;;  %p825_p8 = por %p824_p7, %p823_p6 }
  0x17   :  { %v205_v38 = vsub.f32 %v902_v22, %v204_v30  ;;  %v228_v39 = vand.u32 4294901760, %v922_v31  ;;  %92 = vmatpush1.msra.mxu0 %v890_v17  ;;  %v211_v42 = vsub.f32 %v909_v25, %v210_v33  ;;  %v217_v43 = vsub.f32 %v912_v26, %v216_v34 }
  0x18   :  { %v188_v41 = vand.u32 4294901760, %v187_v32  ;;  %v223_v44 = vsub.f32 %v915_v27, %v222_v35  ;;  %94 = vmatprep.subr.mxu0 %v892_v18  ;;  %v194_v48 = vand.u32 4294901760, %v193_v36  ;;  %v200_v49 = vand.u32 4294901760, %v199_v37  ;;  %p826_p9 = pnand %p825_p8, %p819_p5 }
  0x19   :  { %v206_v50 = vand.u32 4294901760, %v205_v38  ;;  %v229_v51 = vsub.f32 %v922_v31, %v228_v39  ;;  %96 = vmatpush1.msra.mxu0 %v904_v23  ;;  %v212_v55 = vand.u32 4294901760, %v211_v42  ;;  %v218_v56 = vand.u32 4294901760, %v217_v43 }
  0x1a   :  { %189 = vmatprep.subr.mxu1 %v188_v41  ;;  %v224_v57 = vand.u32 4294901760, %v223_v44  ;;  %v957_v58 = vand.u32 4294901760, %v49_v40  ;;  %v959_v61 = vand.u32 4294901760, %v48_v45  ;;  %v961_v62 = vand.u32 4294901760, %v47_v46 }
  0x1b   :  { %195 = vmatpush1.msra.mxu1 %v194_v48  ;;  %v230_v60 = vand.u32 4294901760, %v229_v51  ;;  %v963_v63 = vand.u32 4294901760, %v46_v47  ;;  %v968_v2 = vand.u32 4294901760, %v45_v52  ;;  %v970_v3 = vand.u32 4294901760, %v44_v53 }
  0x1c   :  { %201 = vmatprep.subr.mxu1 %v200_v49  ;;  %v966_v0 = vsub.f32 %v49_v40, %v957_v58  ;;  %v972_v4 = vand.u32 4294901760, %v43_v54  ;;  %98 = vmatprep.subr.mxu0 %v957_v58  ;;  %v976_v6 = vsub.f32 %v48_v45, %v959_v61  ;;  %v979_v7 = vsub.f32 %v47_v46, %v961_v62 }
  0x1d   :  { %207 = vmatpush1.msra.mxu1 %v206_v50  ;;  %v982_v8 = vsub.f32 %v46_v47, %v963_v63  ;;  %v984_v12 = vand.u32 4294901760, %v42_v59  ;;  %100 = vmatpush1.msra.mxu0 %v959_v61  ;;  %v989_v14 = vsub.f32 %v45_v52, %v968_v2  ;;  %v992_v19 = vsub.f32 %v44_v53, %v970_v3 }
  0x1e   :  { %213 = vmatprep.subr.mxu1 %v212_v55  ;;  %v234_v13 = vand.u32 4294901760, %v966_v0  ;;  %v995_v32 = vsub.f32 %v43_v54, %v972_v4  ;;  %102 = vmatprep.subr.mxu0 %v961_v62  ;;  %v240_v36 = vand.u32 4294901760, %v976_v6  ;;  %v246_v37 = vand.u32 4294901760, %v979_v7 }
  0x1f   :  { %219 = vmatpush1.msra.mxu1 %v218_v56  ;;  %v252_v38 = vand.u32 4294901760, %v982_v8  ;;  %v1002_v40 = vsub.f32 %v42_v59, %v984_v12  ;;  %104 = vmatpush1.msra.mxu0 %v963_v63  ;;  %v258_v42 = vand.u32 4294901760, %v989_v14  ;;  %v264_v43 = vand.u32 4294901760, %v992_v19 }
  0x20   :  { %225 = vmatprep.subr.mxu1 %v224_v57  ;;  %v235_v41 = vsub.f32 %v966_v0, %v234_v13  ;;  %v270_v44 = vand.u32 4294901760, %v995_v32  ;;  %106 = vmatprep.subr.mxu0 %v968_v2  ;;  %v241_v45 = vsub.f32 %v976_v6, %v240_v36  ;;  %v247_v46 = vsub.f32 %v979_v7, %v246_v37 }
  0x21   :  { %231 = vmatpush1.msra.mxu1 %v230_v60  ;;  %v253_v47 = vsub.f32 %v982_v8, %v252_v38  ;;  %v276_v48 = vand.u32 4294901760, %v1002_v40  ;;  %108 = vmatpush1.msra.mxu0 %v970_v3  ;;  %v259_v50 = vsub.f32 %v989_v14, %v258_v42  ;;  %v265_v51 = vsub.f32 %v992_v19, %v264_v43 }
  0x22   :  { %v236_v49 = vand.u32 4294901760, %v235_v41  ;;  %v271_v52 = vsub.f32 %v995_v32, %v270_v44  ;;  %110 = vmatprep.subr.mxu0 %v972_v4  ;;  %v242_v53 = vand.u32 4294901760, %v241_v45  ;;  %v248_v54 = vand.u32 4294901760, %v247_v46 }
  0x23   :  { %v254_v55 = vand.u32 4294901760, %v253_v47  ;;  %v277_v56 = vsub.f32 %v1002_v40, %v276_v48  ;;  %112 = vmatpush1.msra.mxu0 %v984_v12  ;;  %v260_v57 = vand.u32 4294901760, %v259_v50  ;;  %v266_v59 = vand.u32 4294901760, %v265_v51 }
  0x24   :  { %237 = vmatprep.subr.mxu1 %v236_v49  ;;  %345 = vmatprep.subr.mxu0 %v886_v15  ;;  %v272_v60 = vand.u32 4294901760, %v271_v52  ;;  %v28_v45 = vlaneseq }
  0x25   :  { %243 = vmatpush1.msra.mxu1 %v242_v53  ;;  %v278_v41 = vand.u32 4294901760, %v277_v56 }
  0x26   :  { %249 = vmatprep.subr.mxu1 %v248_v54  ;;  %v29_v46 = vand.u32 127, %v28_v45 }
  0x27   :  { %255 = vmatpush1.msra.mxu1 %v254_v55 }
  0x28   :  { %261 = vmatprep.subr.mxu1 %v260_v57 }
  0x29   :  { %267 = vmatpush1.msra.mxu1 %v266_v59 }
  0x2a   :  { %273 = vmatprep.subr.mxu1 %v272_v60 }
  0x2b   :  { %279 = vmatpush1.msra.mxu1 %v278_v41 }
  0x2c   :  { %457 = vmatprep.subr.mxu1 %v877_v5 }
  0x8b   :  { %v32_v47 = vpop.permute.xlu0 %31 }
  0x8c   :  { %vm36_vm1 = vcmp.eq.s32.totalorder %v29_v46, %v32_v47 }
  0x8d   :  { %v1040_v49 = vsel %vm36_vm1, 1.0, %v846_v1 }
  0x8e   :  { %v60_v50 = vsel %vm58_vm0, %v1040_v49, 0  ;;  %785 = vmatmul.mubr.msk.f32.vlgmr.msra.gmra.mxu1 %vm58_vm0, %v1040_v49 }
  0x8f   :  { %v147_v51 = vsub.f32 %v60_v50, %v60_v50  ;;  %459 = vmatpush1.msra.mxu1 %v879_v9  ;;  %v35_v52 = vpop.permute.xlu0 %34  ;;  %319 = vmatprep.mubr.f32.mxu1 %v846_v1 }
  0x90   :  { %461 = vmatprep.subr.mxu1 %v881_v10  ;;  %vm37_vm2 = vcmp.eq.s32.totalorder %v29_v46, %v35_v52 }
  0x91   :  { %v1050_v53 = vsel %vm37_vm2, 1.0, %v846_v1  ;;  %463 = vmatpush1.msra.mxu1 %v883_v11  ;;  %v148_v54 = vand.u32 4294901760, %v147_v51 }
  0x92   :  { %v63_v55 = vsel %vm58_vm0, %v1050_v53, 0  ;;  %465 = vmatprep.subr.mxu1 %v888_v16  ;;  %786 = vmatmul.mubr.msk.f32.gmra.mxu1 %vm58_vm0, %v1050_v53 }
  0x93   :  { %v158_v56 = vsub.f32 %v63_v55, %v63_v55  ;;  %467 = vmatpush1.msra.mxu1 %v890_v17  ;;  %v149_v57 = vsub.f32 %v147_v51, %v148_v54  ;;  %520 = vmatprep.mubr.f32.mxu1 %v846_v1 }
  0x94   :  { %469 = vmatprep.subr.mxu1 %v892_v18 }
  0x95   :  { %471 = vmatpush1.msra.mxu1 %v904_v23  ;;  %v150_v59 = vand.u32 4294901760, %v149_v57  ;;  %v159_v60 = vand.u32 4294901760, %v158_v56 }
  0x96   :  { %473 = vmatprep.subr.mxu1 %v957_v58 }
  0x97   :  { %475 = vmatpush1.msra.mxu1 %v959_v61  ;;  %151 = vmatmul.mubr.f32.vlgmr.msra.gmra.mxu0 %v150_v59  ;;  %v160_v41 = vsub.f32 %v158_v56, %v159_v60 }
  0x98   :  { %348 = vmatpush1.msra.mxu0 %v896_v20  ;;  %477 = vmatprep.subr.mxu1 %v961_v62 }
  0x99   :  { %351 = vmatprep.subr.mxu0 %v899_v21  ;;  %479 = vmatpush1.msra.mxu1 %v963_v63  ;;  %v161_v45 = vand.u32 4294901760, %v160_v41 }
  0x9a   :  { %354 = vmatpush1.msra.mxu0 %v902_v22  ;;  %481 = vmatprep.subr.mxu1 %v968_v2 }
  0x9b   :  { %156 = vmatprep.mubr.f32.mxu0 %v846_v1  ;;  %357 = vmatprep.subr.mxu0 %v909_v25 }
  0x9c   :  { %483 = vmatpush1.msra.mxu1 %v970_v3  ;;  %162 = vmatmul.mubr.f32.gmra.mxu0 %v161_v45 }
  0x9d   :  { %360 = vmatpush1.msra.mxu0 %v912_v26  ;;  %485 = vmatprep.subr.mxu1 %v972_v4 }
  0x9e   :  { %363 = vmatprep.subr.mxu0 %v915_v27  ;;  %487 = vmatpush1.msra.mxu1 %v984_v12 }
  0x9f   :  { %366 = vmatpush1.msra.mxu0 %v922_v31  ;;  %524 = vmatmul.mubr.f32.vlgmr.msra.gmra.mxu1 %v148_v54 }
  0xa0   :  { %683 = vmatprep.subr.mxu1 %v877_v5  ;;  %369 = vmatprep.subr.mxu0 %v966_v0 }
  0xa1   :  { %685 = vmatpush1.msra.mxu1 %v879_v9  ;;  %372 = vmatpush1.msra.mxu0 %v976_v6 }
  0xa2   :  { %687 = vmatprep.subr.mxu1 %v881_v10  ;;  %375 = vmatprep.subr.mxu0 %v979_v7 }
  0xa3   :  { %529 = vmatprep.mubr.f32.mxu1 %v846_v1  ;;  %689 = vmatpush1.msra.mxu1 %v883_v11 }
  0xa4   :  { %378 = vmatpush1.msra.mxu0 %v982_v8  ;;  %533 = vmatmul.mubr.f32.gmra.mxu1 %v159_v60 }
  0xa5   :  { %691 = vmatprep.subr.mxu1 %v888_v16  ;;  %381 = vmatprep.subr.mxu0 %v989_v14 }
  0xa6   :  { %693 = vmatpush1.msra.mxu1 %v890_v17  ;;  %384 = vmatpush1.msra.mxu0 %v992_v19 }
  0xa7   :  { %695 = vmatprep.subr.mxu1 %v892_v18  ;;  %387 = vmatprep.subr.mxu0 %v995_v32 }
  0xa8   :  { %697 = vmatpush1.msra.mxu1 %v904_v23  ;;  %390 = vmatpush1.msra.mxu0 %v1002_v40 }
  0xa9   :  { %423 = vmatprep.mubr.f32.mxu0 %v846_v1  ;;  %699 = vmatprep.subr.mxu1 %v957_v58 }
  0xaa   :  { %426 = vmatmul.mubr.f32.vlgmr.msra.gmra.mxu0 %v147_v51  ;;  %558 = vmatprep.subr.mxu0 %v186_v24 }
  0xab   :  { %701 = vmatpush1.msra.mxu1 %v959_v61  ;;  %562 = vmatpush1.msra.mxu0 %v192_v28 }
  0xac   :  { %703 = vmatprep.subr.mxu1 %v961_v62  ;;  %566 = vmatprep.subr.mxu0 %v198_v29 }
  0xad   :  { %705 = vmatpush1.msra.mxu1 %v963_v63  ;;  %431 = vmatprep.mubr.f32.mxu0 %v846_v1 }
  0xae   :  { %570 = vmatpush1.msra.mxu0 %v204_v30  ;;  %707 = vmatprep.subr.mxu1 %v968_v2 }
  0xaf   :  { %434 = vmatmul.mubr.f32.gmra.mxu0 %v158_v56  ;;  %574 = vmatprep.subr.mxu0 %v210_v33 }
  0xb0   :  { %709 = vmatpush1.msra.mxu1 %v970_v3  ;;  %578 = vmatpush1.msra.mxu0 %v216_v34 }
  0xb1   :  { %711 = vmatprep.subr.mxu1 %v972_v4  ;;  %582 = vmatprep.subr.mxu0 %v222_v35 }
  0xb2   :  { %713 = vmatpush1.msra.mxu1 %v984_v12  ;;  %746 = vmatprep.mubr.f32.mxu1 %v846_v1 }
  0xb3   :  { %586 = vmatpush1.msra.mxu0 %v228_v39  ;;  %789 = vmatmul.mubr.msk.f32.vlgmr.msra.gmra.mxu1 %vm58_vm0, %v1040_v49 }
  0xb4   :  { %590 = vmatprep.subr.mxu0 %v234_v13  ;;  %753 = vmatprep.mubr.f32.mxu1 %v846_v1 }
  0xb5   :  { %594 = vmatpush1.msra.mxu0 %v240_v36  ;;  %651 = vmatprep.mubr.f32.mxu0 %v846_v1 }
  0xb6   :  { %598 = vmatprep.subr.mxu0 %v246_v37 }
  0xb7   :  { %602 = vmatpush1.msra.mxu0 %v252_v38  ;;  %790 = vmatmul.mubr.msk.f32.gmra.mxu1 %vm58_vm0, %v1050_v53 }
  0xb8   :  { %606 = vmatprep.subr.mxu0 %v258_v42 }
  0xb9   :  { %610 = vmatpush1.msra.mxu0 %v264_v43 }
  0xba   :  { %614 = vmatprep.subr.mxu0 %v270_v44 }
  0xbb   :  { %618 = vmatpush1.msra.mxu0 %v276_v48 }
  0xbc   :  { %787 = vmatmul.mubr.msk.f32.vlgmr.msra.gmra.mxu0 %vm58_vm0, %v1040_v49 }
  0xbd   :  { %658 = vmatprep.mubr.f32.mxu0 %v846_v1 }
  0xc0   :  { %788 = vmatmul.mubr.msk.f32.gmra.mxu0 %vm58_vm0, %v1050_v53 }
 0x14e   :  { %v315_v5 = vpop.f32.mrf.mxu1 }
 0x150   :  { %v317_v9 = vpop.f32.mrf.mxu1 }
 0x152   :  { %v322_v11 = vpop.f32.mrf.mxu1 }
 0x154   :  { %v324_v16 = vpop.f32.mrf.mxu1 }
 0x157   :  { %v152_v10 = vpop.f32.mrf.mxu0 }
 0x158   :  { %v316_v25 = vadd.f32 %v315_v5, %v152_v10 }
 0x159   :  { %v154_v15 = vpop.f32.mrf.mxu0 }
 0x15a   :  { %v318_v1 = vadd.f32 %v317_v9, %v154_v15 }
 0x15c   :  { %v163_v17 = vpop.f32.mrf.mxu0 }
 0x15d   :  { %v323_v30 = vadd.f32 %v322_v11, %v163_v17 }
 0x15e   :  { %v165_v20 = vpop.f32.mrf.mxu0 }
 0x15f   :  { %v525_v18 = vpop.f32.mrf.mxu1  ;;  %v325_v34 = vadd.f32 %v324_v16, %v165_v20 }
 0x161   :  { %v527_v21 = vpop.f32.mrf.mxu1 }
 0x164   :  { %v534_v23 = vpop.f32.mrf.mxu1 }
 0x166   :  { %v536_v26 = vpop.f32.mrf.mxu1 }
 0x16a   :  { %v427_v22 = vpop.f32.mrf.mxu0 }
 0x16b   :  { %v428_v28 = vadd.f32 %v427_v22, %v316_v25 }
 0x16c   :  { %v429_v24 = vpop.f32.mrf.mxu0 }
 0x16d   :  { %v430_v31 = vadd.f32 %v429_v24, %v318_v1  ;;  %v526_v39 = vadd.f32 %v525_v18, %v428_v28 }
 0x16f   :  { %v435_v27 = vpop.f32.mrf.mxu0  ;;  %v528_v0 = vadd.f32 %v527_v21, %v430_v31 }
 0x170   :  { %v436_v35 = vadd.f32 %v435_v27, %v323_v30 }
 0x171   :  { %v437_v33 = vpop.f32.mrf.mxu0 }
 0x172   :  { %v438_v62 = vadd.f32 %v437_v33, %v325_v34  ;;  %v535_v6 = vadd.f32 %v534_v23, %v436_v35 }
 0x173   :  { %v749_v29 = vpop.f32.mrf.mxu1 }
 0x174   :  { %v537_v14 = vadd.f32 %v536_v26, %v438_v62 }
 0x175   :  { %v751_v58 = vpop.f32.mrf.mxu1 }
 0x177   :  { %v756_v7 = vpop.f32.mrf.mxu1 }
 0x179   :  { %v758_v37 = vpop.f32.mrf.mxu1 }
 0x17c   :  { %v654_v61 = vpop.f32.mrf.mxu0 }
 0x17d   :  { %v655_v63 = vadd.f32 %v654_v61, %v526_v39 }
 0x17e   :  { %v656_v2 = vpop.f32.mrf.mxu0 }
 0x17f   :  { %v750_v3 = vadd.f32 %v749_v29, %v655_v63  ;;  %v657_v4 = vadd.f32 %v656_v2, %v528_v0 }
 0x180   :  { %v661_v8 = vpop.f32.mrf.mxu0 }
 0x181   :  { %761 = vst [vmem:[#allocation5] sm:$0xff] %v750_v3  ;;  %v752_v12 = vadd.f32 %v751_v58, %v657_v4  ;;  %v662_v13 = vadd.f32 %v661_v8, %v535_v6 }
 0x182   :  { %v663_v19 = vpop.f32.mrf.mxu0 }
 0x183   :  { %763 = vst.msk [vmem:[#allocation5 + $0x8] sm:$0xff] %vm762_vm3, %v752_v12  ;;  %v757_v32 = vadd.f32 %v756_v7, %v662_v13  ;;  %v664_v36 = vadd.f32 %v663_v19, %v537_v14 }
 0x185   :  { %764 = vst [vmem:[#allocation5 + $0x10] sm:$0xff] %v757_v32  ;;  %v759_v38 = vadd.f32 %v758_v37, %v664_v36 }
 0x187   :  { %765 = vst.msk [vmem:[#allocation5 + $0x18] sm:$0xff] %vm762_vm3, %v759_v38 }
 0x188   :  { %829 = shalt.err (!%p826_p9)
}
 0x189   :  { %777 = dma.vmem_to_hbm [thread:$0]  %s772_s1, 512, %s1159_s2, [#allocation4], %s843_s12, %s843_s12, %s844_s13  }
 0x18a   :  { %840 = dma.done.wait [#allocation4], 512  }
 0x18b   :  { %841 = vsyncadd [#allocation4], 4294966784 }
 0x18c   :  { %781 = vsyncpa [#allocation3], 1 }
 0x18d   :  { %782 = vsyncpa [#allocation4], 1 }

</bundles_post_ra>
